<compile_context>
chip_gen: v5e
topology: v5e:2x2
jax: 0.10.0
libtpu: 0.0.40
codegen_flags: <defaults>
</compile_context>

<pallas_src>
import functools

import jax
import jax.numpy as jnp
from jax.experimental import pallas as pl
from jax.experimental.pallas import tpu as pltpu

_LANES = 128
_SUBLANES = 8


def _qloss_kernel(pred_ref, tnext_ref, rew_ref, done_ref, out_ref, acc_ref,
                  *, gamma: float, inv_half_n: float):
    i = pl.program_id(0)

    @pl.when(i == 0)
    def _():
        acc_ref[...] = jnp.zeros_like(acc_ref)

    # Fused TD-target + squared error: all elementwise, stays on the VPU.
    target_q = rew_ref[...] + (1.0 - done_ref[...]) * gamma * tnext_ref[...]
    diff = target_q - pred_ref[...]
    sq = diff * diff                                   # (tile_rows, 128)

    tr = sq.shape[0]
    if tr == _SUBLANES:
        # Tile is exactly one vreg tall: accumulate directly.
        acc_ref[...] += sq
    else:
        # Fold (tile_rows, 128) -> (8, 128) with vreg-wise adds. The reshape only
        # splits the sublane-aligned leading axis (tr % 8 == 0), so no XLU work;
        # the full cross-lane reduction happens once, in the finalize branch.
        acc_ref[...] += jnp.sum(
            sq.reshape(tr // _SUBLANES, _SUBLANES, _LANES), axis=0)

    @pl.when(i == pl.num_programs(0) - 1)
    def _():
        # Single XLU reduce + fused (0.5 / N) scale, paid exactly once.
        out_ref[...] = jnp.reshape(jnp.sum(acc_ref[...]) * inv_half_n, (1, 1))


def _round_up(x: int, m: int) -> int:
    return (x + m - 1) // m * m


def _to_tiles(x, rows: int):
    """Flatten, zero-pad to rows*128 elements, reshape lane-dense (rows, 128)."""
    x = jnp.asarray(x, jnp.float32).reshape(-1)
    pad = rows * _LANES - x.shape[0]
    if pad:
        x = jnp.pad(x, (0, pad))
    return x.reshape(rows, _LANES)


def q_loss(predicted_q_value, target_next_q, reward, done,
           gamma: float = 0.99, max_tile_rows: int = 2048):
    """Pallas DDPG QLoss: mean(0.5 * (r + (1-d)*gamma*q_next - q)^2).

    Accepts any shape (typically [B, 1] float32); all four inputs must match.
    max_tile_rows=2048 keeps per-step VMEM at 4 inputs * 2 buffers * 1 MiB = 8 MiB,
    within the default scoped VMEM limit on v5e / v6e / v7x.
    """
    n = predicted_q_value.size  # original element count (mean denominator)

    # Lane-dense layout: (rows, 128) with rows a multiple of 8 and of tile_rows.
    rows = _round_up(pl.cdiv(n, _LANES), _SUBLANES)
    tile_rows = min(max_tile_rows, rows)
    rows = _round_up(rows, tile_rows)
    grid = (rows // tile_rows,)

    args = [_to_tiles(a, rows) for a in
            (predicted_q_value, target_next_q, reward, done)]

    kernel = functools.partial(_qloss_kernel, gamma=float(gamma),
                               inv_half_n=0.5 / float(n))

    in_spec = pl.BlockSpec((tile_rows, _LANES), lambda i: (i, 0))
    out = pl.pallas_call(
        kernel,
        out_shape=jax.ShapeDtypeStruct((1, 1), jnp.float32),
        grid=grid,
        in_specs=[in_spec, in_spec, in_spec, in_spec],
        out_specs=pl.BlockSpec((1, 1), lambda i: (0, 0)),
        scratch_shapes=[pltpu.VMEM((_SUBLANES, _LANES), jnp.float32)],
        compiler_params=pltpu.CompilerParams(
            dimension_semantics=("arbitrary",)),  # reduction over the batch grid axis
    )(*args)
    return out[0, 0]


def q_loss_ref(predicted_q_value, target_next_q, reward, done, gamma=0.99):
    target_q = reward + (1.0 - done) * gamma * target_next_q
    return jnp.mean(0.5 * (target_q - predicted_q_value) ** 2)


if __name__ == "__main__":
    key = jax.random.PRNGKey(0)
    k1, k2, k3, k4 = jax.random.split(key, 4)

    def make_inputs(B):
        pq = jax.random.normal(k1, (B, 1), dtype=jnp.float32)
        tn = jax.random.normal(k2, (B, 1), dtype=jnp.float32)
        rw = jax.random.normal(k3, (B, 1), dtype=jnp.float32)
        dn = (jax.random.uniform(k4, (B, 1)) < 0.1).astype(jnp.float32)
        return pq, tn, rw, dn

    # Case 1: small batch -> single lane-dense tile, grid=(1,), no accumulation loop.
    a = make_inputs(64)
    loss = q_loss(*a)
    jax.block_until_ready(loss)
    ref = q_loss_ref(*a)
    assert jnp.allclose(loss, ref, rtol=2e-5, atol=1e-5), (loss, ref)

    # Case 2: ragged batch with a forced multi-step grid (exercises zero-padding,
    # the vector accumulator across grid steps, and the tile-fold path).
    b = make_inputs(3000)
    loss2 = q_loss(*b, max_tile_rows=16)
    jax.block_until_ready(loss2)
    ref2 = q_loss_ref(*b)
    assert jnp.allclose(loss2, ref2, rtol=2e-5, atol=1e-5), (loss2, ref2)

    print("KERNEL_OK")
</pallas_src>

<mosaic_0001>
module attributes {stable_mosaic.version = 11 : i64} {
  func.func @_qloss_kernel(%arg0: i32, %arg1: memref<8x128xf32, #tpu.memory_space<vmem>>, %arg2: memref<8x128xf32, #tpu.memory_space<vmem>>, %arg3: memref<8x128xf32, #tpu.memory_space<vmem>>, %arg4: memref<8x128xf32, #tpu.memory_space<vmem>>, %arg5: memref<1x1xf32, #tpu.memory_space<vmem>>, %arg6: memref<8x128xf32, #tpu.memory_space<vmem>>) attributes {dimension_semantics = [#tpu.dimension_semantics<arbitrary>], iteration_bounds = array<i64: 1>, scalar_prefetch = 0 : i64, scratch_operands = 1 : i64, tpu.core_type = #tpu.core_type<tc>, window_params = [{transform_indices = @transform_0, window_bounds = array<i64: 8, 128>}, {transform_indices = @transform_1, window_bounds = array<i64: 8, 128>}, {transform_indices = @transform_2, window_bounds = array<i64: 8, 128>}, {transform_indices = @transform_3, window_bounds = array<i64: 8, 128>}, {pipeline_mode = #tpu.pipeline_mode<synchronous>, transform_indices = @transform_4, window_bounds = array<i64: 1, 1>}]} {
    %c0_i32 = arith.constant 0 : i32
    %0 = arith.cmpi eq, %arg0, %c0_i32 : i32
    %1 = arith.extui %0 : i1 to i32
    %c0_i32_0 = arith.constant 0 : i32
    %2 = arith.cmpi ne, %1, %c0_i32_0 : i32
    scf.if %2 {
      %cst_15 = arith.constant 0.000000e+00 : f32
      %21 = vector.broadcast %cst_15 : f32 to vector<8x128xf32>
      %c0_16 = arith.constant 0 : index
      %c0_17 = arith.constant 0 : index
      %22 = vector.load %arg6[%c0_16, %c0_17] : memref<8x128xf32, #tpu.memory_space<vmem>>, vector<8x128xf32>
      tpu.vector_store %arg6[%c0_16, %c0_17], %21 {strides = array<i32>} : memref<8x128xf32, #tpu.memory_space<vmem>>, vector<8x128xf32>,
    } else {
    }
    %c0 = arith.constant 0 : index
    %c0_1 = arith.constant 0 : index
    %3 = vector.load %arg3[%c0, %c0_1] : memref<8x128xf32, #tpu.memory_space<vmem>>, vector<8x128xf32>
    %c0_2 = arith.constant 0 : index
    %c0_3 = arith.constant 0 : index
    %4 = vector.load %arg4[%c0_2, %c0_3] : memref<8x128xf32, #tpu.memory_space<vmem>>, vector<8x128xf32>
    %cst = arith.constant 1.000000e+00 : f32
    %5 = vector.broadcast %cst : f32 to vector<8x128xf32>
    %6 = arith.subf %5, %4 : vector<8x128xf32>
    %cst_4 = arith.constant 9.900000e-01 : f32
    %7 = vector.broadcast %cst_4 : f32 to vector<8x128xf32>
    %8 = arith.mulf %6, %7 : vector<8x128xf32>
    %c0_5 = arith.constant 0 : index
    %c0_6 = arith.constant 0 : index
    %9 = vector.load %arg2[%c0_5, %c0_6] : memref<8x128xf32, #tpu.memory_space<vmem>>, vector<8x128xf32>
    %10 = arith.mulf %8, %9 : vector<8x128xf32>
    %11 = arith.addf %3, %10 : vector<8x128xf32>
    %c0_7 = arith.constant 0 : index
    %c0_8 = arith.constant 0 : index
    %12 = vector.load %arg1[%c0_7, %c0_8] : memref<8x128xf32, #tpu.memory_space<vmem>>, vector<8x128xf32>
    %13 = arith.subf %11, %12 : vector<8x128xf32>
    %14 = arith.mulf %13, %13 : vector<8x128xf32>
    %c0_9 = arith.constant 0 : index
    %c0_10 = arith.constant 0 : index
    %15 = vector.load %arg6[%c0_9, %c0_10] : memref<8x128xf32, #tpu.memory_space<vmem>>, vector<8x128xf32>
    %16 = arith.addf %15, %14 : vector<8x128xf32>
    %c0_11 = arith.constant 0 : index
    %c0_12 = arith.constant 0 : index
    %17 = vector.load %arg6[%c0_11, %c0_12] : memref<8x128xf32, #tpu.memory_space<vmem>>, vector<8x128xf32>
    tpu.vector_store %arg6[%c0_11, %c0_12], %16 {strides = array<i32>} : memref<8x128xf32, #tpu.memory_space<vmem>>, vector<8x128xf32>,
    %c0_i32_13 = arith.constant 0 : i32
    %18 = arith.cmpi eq, %arg0, %c0_i32_13 : i32
    %19 = arith.extui %18 : i1 to i32
    %c0_i32_14 = arith.constant 0 : i32
    %20 = arith.cmpi ne, %19, %c0_i32_14 : i32
    scf.if %20 {
      %c0_15 = arith.constant 0 : index
      %c0_16 = arith.constant 0 : index
      %21 = vector.load %arg6[%c0_15, %c0_16] : memref<8x128xf32, #tpu.memory_space<vmem>>, vector<8x128xf32>
      %22 = vector.shape_cast %21 : vector<8x128xf32> to vector<1x8x128xf32>
      %cst_17 = arith.constant dense<0.000000e+00> : vector<1xf32>
      %23 = vector.multi_reduction <add>, %22, %cst_17 [1, 2] : vector<1x8x128xf32> to vector<1xf32>
      %24 = vector.shape_cast %23 : vector<1xf32> to vector<1x1x1xf32>
      %25 = vector.extract %24[0, 0, 0] : f32 from vector<1x1x1xf32>
      %cst_18 = arith.constant 7.812500e-03 : f32
      %26 = arith.mulf %25, %cst_18 : f32
      %27 = vector.broadcast %26 : f32 to vector<1x1xf32>
      %c0_19 = arith.constant 0 : index
      %c0_20 = arith.constant 0 : index
      %28 = vector.load %arg5[%c0_19, %c0_20] : memref<1x1xf32, #tpu.memory_space<vmem>>, vector<1x1xf32>
      tpu.vector_store %arg5[%c0_19, %c0_20], %27 {strides = array<i32>} : memref<1x1xf32, #tpu.memory_space<vmem>>, vector<1x1xf32>,
    } else {
    }
    return
  }
  func.func @transform_0(%arg0: i32) -> (i32, i32) {
    %c0_i32 = arith.constant 0 : i32
    %c0_i32_0 = arith.constant 0 : i32
    return %arg0, %c0_i32 : i32, i32
  }
  func.func @transform_1(%arg0: i32) -> (i32, i32) {
    %c0_i32 = arith.constant 0 : i32
    %c0_i32_0 = arith.constant 0 : i32
    return %arg0, %c0_i32 : i32, i32
  }
  func.func @transform_2(%arg0: i32) -> (i32, i32) {
    %c0_i32 = arith.constant 0 : i32
    %c0_i32_0 = arith.constant 0 : i32
    return %arg0, %c0_i32 : i32, i32
  }
  func.func @transform_3(%arg0: i32) -> (i32, i32) {
    %c0_i32 = arith.constant 0 : i32
    %c0_i32_0 = arith.constant 0 : i32
    return %arg0, %c0_i32 : i32, i32
  }
  func.func @transform_4(%arg0: i32) -> (i32, i32) {
    %c0_i32 = arith.constant 0 : i32
    %c0_i32_0 = arith.constant 0 : i32
    %c0_i32_1 = arith.constant 0 : i32
    return %c0_i32, %c0_i32_0 : i32, i32
  }
}

</mosaic_0001>

<bundles_post_ra>
// kernel: tpu_custom_call.1
= control target key start
LH: loop header
LB: loop body
LE: loop exit
PB: predicated region body
PF: predicated region fallthrough
CT: control target
= control target key end

     0   :  { %9 = vsyncpa [#allocation4], 0  ;;  %s307_s0 = inlined_call_operand.hbm [shape: f32[8,128], index: 0, kind: input, shape index: {}]   ;;  %s308_s1 = inlined_call_operand.hbm [shape: f32[8,128], index: 1, kind: input, shape index: {}]   ;;  %s309_s2 = inlined_call_operand.hbm [shape: f32[8,128], index: 2, kind: input, shape index: {}]   ;;  %s310_s3 = inlined_call_operand.hbm [shape: f32[8,128], index: 3, kind: input, shape index: {}]   ;;  %s311_s4 = inlined_call_operand.hbm [shape: f32[1,1], index: 4, kind: output, shape index: {}]  }
   0x1   :  { %10 = vsyncpa [#allocation7], 0 }
   0x2   :  { %11 = vsyncpa [#allocation10], 0  ;;  %s29_s17 = sshll.u32 %s308_s1, 4  ;;  %s30_s17 = int_to_ptr.hbm [resolvable:$true] %s29_s17 }
   0x3   :  { %12 = vsyncpa [#allocation5], 0  ;;  %s262_s18 = smov [#allocation6]   ;;  %s18_s22 = sshll.u32 %s307_s0, 4  ;;  %s19_s22 = int_to_ptr.hbm [resolvable:$true] %s18_s22 }
   0x4   :  { %s31_s19 = sshll.u32 %s262_s18, 4  ;;  %s263_s23 = smov [#allocation3]   ;;  %s32_s19 = int_to_ptr.vmem [resolvable:$true] %s31_s19 }
   0x5   :  { %34 = dma.hbm_to_vmem [thread:$0]  %s30_s17, 128, %s32_s19, [#allocation7]  }
   0x6   :  { %s20_s24 = sshll.u32 %s263_s23, 4  ;;  %s40_s27 = sshll.u32 %s309_s2, 4  ;;  %s21_s24 = int_to_ptr.vmem [resolvable:$true] %s20_s24  ;;  %s41_s27 = int_to_ptr.hbm [resolvable:$true] %s40_s27 }
   0x7   :  { %23 = dma.hbm_to_vmem [thread:$0]  %s19_s22, 128, %s21_s24, [#allocation4]  }
   0x8   :  { %s51_s29 = sshll.u32 %s310_s3, 4  ;;  %s264_s30 = smov [#allocation8]   ;;  %s52_s29 = int_to_ptr.hbm [resolvable:$true] %s51_s29 }
   0x9   :  { %s42_s5 = sshll.u32 %s264_s30, 4  ;;  %s265_s0 = smov [#allocation9]   ;;  %s43_s5 = int_to_ptr.vmem [resolvable:$true] %s42_s5 }
   0xa   :  { %45 = dma.hbm_to_vmem [thread:$0]  %s41_s27, 128, %s43_s5, [#allocation7]  }
   0xb   :  { %s53_s6 = sshll.u32 %s265_s0, 4  ;;  %s54_s6 = int_to_ptr.vmem [resolvable:$true] %s53_s6 }
   0xc   :  { %56 = dma.hbm_to_vmem [thread:$0]  %s52_s29, 128, %s54_s6, [#allocation10]  }
   0xd   :  { %254 = dma.done.wait [#allocation4], 128  }
   0xe   :  { %255 = vsyncadd [#allocation4], 4294967168 }
   0xf   :  { %256 = dma.done.wait [#allocation7], 256  }
  0x10   :  { %257 = vsyncadd [#allocation7], 4294967040 }
  0x11   :  { %258 = dma.done.wait [#allocation10], 128  }
  0x12   :  { %259 = vsyncadd [#allocation10], 4294967168  ;;  %v79_v0 = vld [vmem:[#allocation9] sm:$0xff]  ;;  %v82_v2 = vld [vmem:[#allocation6] sm:$0xff]  ;;  %s266_s2 = smov [#allocation11]   ;;  %s115_s9 = sshll.u32 %s311_s4, 4  ;;  %s116_s9 = int_to_ptr.hbm [resolvable:$true] %s115_s9 }
  0x13   :  { %v80_v1 = vsub.f32 1.0, %v79_v0  ;;  %v78_v4 = vld [vmem:[#allocation8] sm:$0xff]  ;;  %v85_v6 = vld [vmem:[#allocation3] sm:$0xff]  ;;  %s113_s3 = sshll.u32 %s266_s2, 4  ;;  %vm106_vm0 = vcmask 0   ;;  %s114_s3 = int_to_ptr.vmem [resolvable:$true] %s113_s3 }
  0x15   :  { %v81_v3 = vmul.f32 0.99, %v80_v1 }
  0x17   :  { %v83_v5 = vmul.f32 %v82_v2, %v81_v3 }
  0x19   :  { %v84_v7 = vadd.f32 %v83_v5, %v78_v4 }
  0x1b   :  { %v86_v8 = vsub.f32 %v84_v7, %v85_v6 }
  0x1d   :  { %v87_v9 = vmul.f32 %v86_v8, %v86_v8 }
  0x1f   :  { %95 = vadd.xlane.f32.xlu0 %v87_v9 }
  0x92   :  { %v96_v10 = vpop.xlane.xlu0 %95 }
  0x93   :  { %v97_v11 = vrot.slane %v96_v10, 4 }
  0x95   :  { %v98_v12 = vadd.f32 %v97_v11, %v96_v10 }
  0x97   :  { %v99_v13 = vrot.slane %v98_v12, 2 }
  0x99   :  { %v100_v14 = vadd.f32 %v99_v13, %v98_v12 }
  0x9b   :  { %v101_v15 = vrot.slane %v100_v14, 1 }
  0x9d   :  { %v102_v16 = vadd.f32 %v101_v15, %v100_v14 }
  0x9f   :  { %127 = vpush %v102_v16 }
  0xd0   :  { %s128_s10 = spop %127 }
  0xd1   :  { %s104_s11 = smul.f32 0.0078125, %s128_s10 }
  0xd3   :  { %v105_v17 = vstv %s104_s11 }
  0xd4   :  { %107 = vst.msk [vmem:[#allocation11] sm:$0x1] %vm106_vm0, %v105_v17 }
  0xd5   :  { %118 = dma.vmem_to_hbm [thread:$0]  %s114_s3, 16, %s116_s9, [#allocation5]  }
  0xd6   :  { %260 = dma.done.wait [#allocation5], 16  }
  0xd7   :  { %261 = vsyncadd [#allocation5], 4294967280 }
  0xd8   :  { %123 = vsyncpa [#allocation4], 1 }
  0xd9   :  { %124 = vsyncpa [#allocation7], 1 }
  0xda   :  { %125 = vsyncpa [#allocation10], 1 }
  0xdb   :  { %126 = vsyncpa [#allocation5], 1 }

</bundles_post_ra>
